<compile_context>
chip_gen: v7x
topology: tpu7x:2x2x1
jax: 0.10.0
libtpu: 0.0.40
codegen_flags: <defaults>
</compile_context>

<pallas_src>
import functools

import jax
import jax.numpy as jnp
from jax.experimental import pallas as pl
from jax.experimental.pallas import tpu as pltpu


def _ls_ce_kernel(x_ref, t_ref, o_ref, *, smoothing: float, n_valid: int):
    confidence = 1.0 - smoothing

    x = x_ref[...].astype(jnp.float32)          # (TN, C)  upcast in-kernel only
    t = t_ref[...]                              # (TN, 1) int32
    tn, c = x.shape

    # numerically-stable pieces of log_softmax, without materializing logprobs
    m = jnp.max(x, axis=-1, keepdims=True)                               # (TN, 1)
    shifted = x - m                                                      # (TN, C)
    lse = jnp.log(jnp.sum(jnp.exp(shifted), axis=-1, keepdims=True))     # (TN, 1)

    # masked lane reduction == gather of shifted[target]
    col = jax.lax.broadcasted_iota(jnp.int32, (tn, c), 1)
    tgt_shift = jnp.sum(jnp.where(col == t, shifted, 0.0),
                        axis=-1, keepdims=True)                          # (TN, 1)
    sum_shift = jnp.sum(shifted, axis=-1, keepdims=True)                 # (TN, 1)

    # loss = conf*(lse - tgt_shift) + smooth*(lse - sum_shift/C)
    loss = lse - confidence * tgt_shift - (smoothing / float(c)) * sum_shift

    # mask out rows that only exist because of batch padding
    row = jax.lax.broadcasted_iota(jnp.int32, (tn, 1), 0) + pl.program_id(0) * tn
    loss = jnp.where(row < n_valid, loss, 0.0)

    partial = jnp.sum(loss, axis=0, keepdims=True)                       # (1, 1)
    # lane-dense per-tile output slab (kernel sees (8, 128); leading dim squeezed)
    o_ref[...] = jnp.broadcast_to(partial, (8, 128))


def label_smoothing_cross_entropy(x, target, smoothing: float = 0.1,
                                  block_n: int = 256):
    """x: (N, C) float (f32/bf16), target: (N,) int. Returns scalar f32 loss."""
    assert smoothing < 1.0
    assert block_n % 8 == 0
    n, c = x.shape

    tn = min(block_n, pl.cdiv(n, 8) * 8)        # batch tile, multiple of 8
    n_pad = pl.cdiv(n, tn) * tn
    num_tiles = n_pad // tn

    t2d = target.astype(jnp.int32).reshape(n, 1)
    if n_pad != n:
        x = jnp.pad(x, ((0, n_pad - n), (0, 0)))
        t2d = jnp.pad(t2d, ((0, n_pad - n), (0, 0)))

    partials = pl.pallas_call(
        functools.partial(_ls_ce_kernel, smoothing=smoothing, n_valid=n),
        out_shape=jax.ShapeDtypeStruct((num_tiles, 8, 128), jnp.float32),
        grid_spec=pl.GridSpec(
            grid=(num_tiles,),
            in_specs=[
                pl.BlockSpec((tn, c), lambda i: (i, 0)),
                pl.BlockSpec((tn, 1), lambda i: (i, 0)),
            ],
            out_specs=pl.BlockSpec((None, 8, 128), lambda i: (i, 0, 0)),
        ),
        compiler_params=pltpu.CompilerParams(
            dimension_semantics=("parallel",),        # independent tiles -> 2 TCs on v7x
            vmem_limit_bytes=64 * 1024 * 1024,
        ),
    )(x, t2d)

    # tiny final reduction + mean over the true batch size
    return jnp.sum(partials[:, 0, 0]) / jnp.float32(n)


def _reference(x, target, smoothing=0.1):
    confidence = 1.0 - smoothing
    logprobs = jax.nn.log_softmax(x.astype(jnp.float32), axis=-1)
    nll = -jnp.take_along_axis(logprobs, target[:, None].astype(jnp.int32),
                               axis=-1)[:, 0]
    smooth = -jnp.mean(logprobs, axis=-1)
    return jnp.mean(confidence * nll + smoothing * smooth)


if __name__ == "__main__":
    key = jax.random.PRNGKey(0)
    kx, kt, kx2, kt2 = jax.random.split(key, 4)

    # Case 1: small f32 logits, N a multiple of 8 (single tile).
    N, C = 8, 32
    x = jax.random.normal(kx, (N, C), dtype=jnp.float32)
    target = jax.random.randint(kt, (N,), 0, C, dtype=jnp.int32)
    loss = jax.block_until_ready(label_smoothing_cross_entropy(x, target, 0.1))
    ref = _reference(x, target, 0.1)
    assert jnp.allclose(loss, ref, atol=1e-5, rtol=1e-5), (loss, ref)

    # Case 2: ragged batch (exercises padded-row masking) with bf16 logits.
    N2, C2 = 10, 40
    x2 = jax.random.normal(kx2, (N2, C2), dtype=jnp.float32).astype(jnp.bfloat16)
    t2 = jax.random.randint(kt2, (N2,), 0, C2, dtype=jnp.int32)
    loss2 = jax.block_until_ready(label_smoothing_cross_entropy(x2, t2, 0.1))
    ref2 = _reference(x2, t2, 0.1)
    assert jnp.allclose(loss2, ref2, atol=1e-3, rtol=1e-3), (loss2, ref2)

    print("KERNEL_OK")
</pallas_src>

<mosaic_0001>
module attributes {stable_mosaic.version = 11 : i64} {
  func.func @_ls_ce_kernel(%arg0: i32, %arg1: memref<8x32xf32, #tpu.memory_space<vmem>>, %arg2: memref<8x1xi32, #tpu.memory_space<vmem>>, %arg3: memref<1x8x128xf32, #tpu.memory_space<vmem>>) attributes {dimension_semantics = [#tpu.dimension_semantics<parallel>], iteration_bounds = array<i64: 1>, scalar_prefetch = 0 : i64, scratch_operands = 0 : i64, tpu.core_type = #tpu.core_type<tc>, window_params = [{transform_indices = @transform_0, window_bounds = array<i64: 8, 32>}, {transform_indices = @transform_1, window_bounds = array<i64: 8, 1>}, {transform_indices = @transform_2, window_bounds = array<i64: 1, 8, 128>}]} {
    %c0 = arith.constant 0 : index
    %c0_0 = arith.constant 0 : index
    %0 = vector.load %arg1[%c0, %c0_0] : memref<8x32xf32, #tpu.memory_space<vmem>>, vector<8x32xf32>
    %c0_1 = arith.constant 0 : index
    %c0_2 = arith.constant 0 : index
    %1 = vector.load %arg2[%c0_1, %c0_2] : memref<8x1xi32, #tpu.memory_space<vmem>>, vector<8x1xi32>
    %cst = arith.constant dense<0xFF800000> : vector<8xf32>
    %2 = vector.multi_reduction <maximumf>, %0, %cst [1] : vector<8x32xf32> to vector<8xf32>
    %3 = vector.shape_cast %2 : vector<8xf32> to vector<8x1xf32>
    %4 = vector.broadcast %3 : vector<8x1xf32> to vector<8x32xf32>
    %5 = arith.subf %0, %4 : vector<8x32xf32>
    %6 = math.exp %5 : vector<8x32xf32>
    %cst_3 = arith.constant dense<0.000000e+00> : vector<8xf32>
    %7 = vector.multi_reduction <add>, %6, %cst_3 [1] : vector<8x32xf32> to vector<8xf32>
    %8 = vector.shape_cast %7 : vector<8xf32> to vector<8x1xf32>
    %9 = math.log %8 : vector<8x1xf32>
    %10 = tpu.iota {dimensions = array<i32: 1>} : vector<8x32xi32>
    %11 = vector.broadcast %1 : vector<8x1xi32> to vector<8x32xi32>
    %12 = arith.cmpi eq, %10, %11 : vector<8x32xi32>
    %cst_4 = arith.constant 0.000000e+00 : f32
    %13 = vector.broadcast %cst_4 : f32 to vector<8x32xf32>
    %14 = arith.select %12, %5, %13 : vector<8x32xi1>, vector<8x32xf32>
    %cst_5 = arith.constant dense<0.000000e+00> : vector<8xf32>
    %15 = vector.multi_reduction <add>, %14, %cst_5 [1] : vector<8x32xf32> to vector<8xf32>
    %16 = vector.shape_cast %15 : vector<8xf32> to vector<8x1xf32>
    %cst_6 = arith.constant dense<0.000000e+00> : vector<8xf32>
    %17 = vector.multi_reduction <add>, %5, %cst_6 [1] : vector<8x32xf32> to vector<8xf32>
    %18 = vector.shape_cast %17 : vector<8xf32> to vector<8x1xf32>
    %cst_7 = arith.constant 0.899999976 : f32
    %19 = vector.broadcast %cst_7 : f32 to vector<8x1xf32>
    %20 = arith.mulf %19, %16 : vector<8x1xf32>
    %21 = arith.subf %9, %20 : vector<8x1xf32>
    %cst_8 = arith.constant 3.125000e-03 : f32
    %22 = vector.broadcast %cst_8 : f32 to vector<8x1xf32>
    %23 = arith.mulf %22, %18 : vector<8x1xf32>
    %24 = arith.subf %21, %23 : vector<8x1xf32>
    %25 = tpu.iota {dimensions = array<i32: 0>} : vector<8x1xi32>
    %c8_i32 = arith.constant 8 : i32
    %26 = arith.muli %arg0, %c8_i32 : i32
    %27 = vector.broadcast %26 : i32 to vector<8x1xi32>
    %28 = arith.addi %25, %27 : vector<8x1xi32>
    %c8_i32_9 = arith.constant 8 : i32
    %29 = vector.broadcast %c8_i32_9 : i32 to vector<8x1xi32>
    %30 = arith.cmpi slt, %28, %29 : vector<8x1xi32>
    %cst_10 = arith.constant 0.000000e+00 : f32
    %31 = vector.broadcast %cst_10 : f32 to vector<8x1xf32>
    %32 = arith.select %30, %24, %31 : vector<8x1xi1>, vector<8x1xf32>
    %cst_11 = arith.constant dense<0.000000e+00> : vector<1xf32>
    %33 = vector.multi_reduction <add>, %32, %cst_11 [0] : vector<8x1xf32> to vector<1xf32>
    %34 = vector.shape_cast %33 : vector<1xf32> to vector<1x1xf32>
    %35 = vector.shape_cast %34 : vector<1x1xf32> to vector<1x1xf32>
    %36 = vector.broadcast %35 : vector<1x1xf32> to vector<8x128xf32>
    %c0_12 = arith.constant 0 : index
    %c0_13 = arith.constant 0 : index
    %c0_14 = arith.constant 0 : index
    %37 = vector.load %arg3[%c0_12, %c0_13, %c0_14] : memref<1x8x128xf32, #tpu.memory_space<vmem>>, vector<1x8x128xf32>
    %38 = vector.shape_cast %37 : vector<1x8x128xf32> to vector<8x128xf32>
    %39 = vector.shape_cast %36 : vector<8x128xf32> to vector<1x8x128xf32>
    tpu.vector_store %arg3[%c0_12, %c0_13, %c0_14], %39 {strides = array<i32>} : memref<1x8x128xf32, #tpu.memory_space<vmem>>, vector<1x8x128xf32>,
    return
  }
  func.func @transform_0(%arg0: i32) -> (i32, i32) {
    %c0_i32 = arith.constant 0 : i32
    %c0_i32_0 = arith.constant 0 : i32
    return %arg0, %c0_i32 : i32, i32
  }
  func.func @transform_1(%arg0: i32) -> (i32, i32) {
    %c0_i32 = arith.constant 0 : i32
    %c0_i32_0 = arith.constant 0 : i32
    return %arg0, %c0_i32 : i32, i32
  }
  func.func @transform_2(%arg0: i32) -> (i32, i32, i32) {
    %c0_i32 = arith.constant 0 : i32
    %c0_i32_0 = arith.constant 0 : i32
    %c0_i32_1 = arith.constant 0 : i32
    return %arg0, %c0_i32, %c0_i32_0 : i32, i32, i32
  }
}

</mosaic_0001>

<bundles_post_ra>
// kernel: tpu_custom_call.1
= control target key start
LH: loop header
LB: loop body
LE: loop exit
PB: predicated region body
PF: predicated region fallthrough
CT: control target
= control target key end

     0   :  { %7 = vsyncpa [#allocation3], 0  ;;  %s237_s0 = inlined_call_operand.hbm [shape: f32[8,32], index: 0, kind: input, shape index: {}]   ;;  %s238_s1 = inlined_call_operand.hbm [shape: s32[8,1], index: 1, kind: input, shape index: {}]   ;;  %s239_s2 = inlined_call_operand.hbm [shape: f32[1,8,128], index: 2, kind: output, shape index: {}]  }
   0x1   :  { %8 = vsyncpa [#allocation6], 0 }
   0x2   :  { %9 = vsyncpa [#allocation4], 0  ;;  %s178_s9 = smov [#allocation2]   ;;  %s179_s11 = smov [#allocation5]  }
   0x3   :  { %s16_s10 = sshll.u32 %s178_s9, 4  ;;  %s26_s12 = sshll.u32 %s179_s11, 4  ;;  %s17_s10 = int_to_ptr.vmem [resolvable:$true] %s16_s10  ;;  %s27_s12 = int_to_ptr.vmem [resolvable:$true] %s26_s12 }
   0x4   :  { %s106_s15 = scalar_lea.hbm %s237_s0, 128 }
   0x5   :  { %p107_p0 = scmp.ne.s32.totalorder %s237_s0, %s106_s15  ;;  %p110_p1 = scmp.lt.u32.totalorder %s106_s15, %s237_s0 }
   0x7   :  { %p112_p2 = pnand %p110_p1, %p107_p0 }
   0x9   :  { %115 = shalt.err (!%p112_p2)
}
   0xa   :  { %s116_s20 = scalar_lea.vmem %s17_s10, 128  ;;  %p121_p4 = scmp.lt.s32.totalorder %s17_s10, %s17_s10 }
   0xb   :  { %p117_p3 = scmp.ne.s32.totalorder %s17_s10, %s116_s20  ;;  %p122_p5 = scmp.lt.s32.totalorder %s116_s20, %s116_s20 }
   0xd   :  { %p123_p6 = por %p122_p5, %p121_p4 }
   0xf   :  { %p124_p7 = pnand %p123_p6, %p117_p3 }
  0x11   :  { %127 = shalt.err (!%p124_p7)
}
  0x12   :  { %19 = dma.hbm_to_vmem [thread:$0]  %s237_s0, 128, %s17_s10, [#allocation3]  }
  0x13   :  { %s128_s25 = scalar_lea.hbm %s238_s1, 128 }
  0x14   :  { %p129_p8 = scmp.ne.s32.totalorder %s238_s1, %s128_s25  ;;  %p132_p9 = scmp.lt.u32.totalorder %s128_s25, %s238_s1 }
  0x16   :  { %p134_p10 = pnand %p132_p9, %p129_p8 }
  0x18   :  { %137 = shalt.err (!%p134_p10)
}
  0x19   :  { %s138_s30 = scalar_lea.vmem %s27_s12, 128  ;;  %p143_p12 = scmp.lt.s32.totalorder %s27_s12, %s27_s12 }
  0x1a   :  { %p139_p11 = scmp.ne.s32.totalorder %s27_s12, %s138_s30  ;;  %p144_p13 = scmp.lt.s32.totalorder %s138_s30, %s138_s30 }
  0x1c   :  { %p145_p0 = por %p144_p13, %p143_p12 }
  0x1e   :  { %p146_p1 = pnand %p145_p0, %p139_p11 }
  0x20   :  { %149 = shalt.err (!%p146_p1)
}
  0x21   :  { %29 = dma.hbm_to_vmem [thread:$0]  %s238_s1, 128, %s27_s12, [#allocation6]  }
  0x22   :  { %172 = dma.done.wait [#allocation3], 128  }
  0x23   :  { %173 = vsyncadd [#allocation3], 4294967168 }
  0x24   :  { %174 = dma.done.wait [#allocation6], 128  }
  0x25   :  { %175 = vsyncadd [#allocation6], 4294967168  ;;  %v180_v0 = vmov 0   ;;  %vm38_vm0 = vcmask 261120   ;;  %v36_v1 = vld [vmem:[#allocation2] sm:$0xff]  ;;  %v37_v3 = vld [vmem:[#allocation5] sm:$0xff]  ;;  %v50_v7 = vlaneseq }
  0x26   :  { %101 = vset.pattern.permute.xlu0 %v180_v0  ;;  %v39_v2 = vsel %vm38_vm0, %v36_v1, -inf  ;;  %s181_s1 = smov [#allocation7]  }
  0x27   :  { %40 = vmax.xlane.f32.xlu0 %v39_v2  ;;  %v51_v8 = vand.u32 127, %v50_v7  ;;  %s87_s4 = sshll.u32 %s181_s1, 4  ;;  %s88_s4 = int_to_ptr.vmem [resolvable:$true] %s87_s4 }
  0x28   :  { %s150_s5 = scalar_lea.vmem %s88_s4, 128  ;;  %p155_p3 = scmp.lt.s32.totalorder %s88_s4, %s88_s4 }
  0x29   :  { %p151_p2 = scmp.ne.s32.totalorder %s88_s4, %s150_s5  ;;  %p156_p4 = scmp.lt.s32.totalorder %s150_s5, %s150_s5 }
  0x2b   :  { %p157_p5 = por %p156_p4, %p155_p3 }
  0x2d   :  { %p158_p6 = pnand %p157_p5, %p151_p2 }
  0x3d   :  { %53 = vperm.xlu0 %101, %v37_v3  }
  0xb4   :  { %v41_v4 = vpop.xlane.xlu0 %40 }
  0xb5   :  { %v42_v5 = vsub.f32 %v36_v1, %v41_v4 }
  0xb7   :  { %v43_v6 = vmul.f32 1.442695, %v42_v5  ;;  %v60_v14 = vsel %vm38_vm0, %v42_v5, 0.0 }
  0xb9   :  { %102 = vpow2.f32 %v43_v6 }
  0xbc   :  { %v54_v9 = vpop.permute.xlu0 %53 }
  0xbd   :  { %vm55_vm1 = vcmp.eq.s32.totalorder %v51_v8, %v54_v9 }
  0xbe   :  { %v56_v12 = vsel %vm55_vm1, %v42_v5, 0.0 }
  0xbf   :  { %v57_v13 = vsel %vm38_vm0, %v56_v12, 0.0 }
  0xc3   :  { %v103_v10 = vpop.eup %102 }
  0xc4   :  { %v45_v11 = vsel %vm38_vm0, %v103_v10, 0.0 }
  0xc5   :  { %46 = vadd.xlane.f32.xlu1 %v45_v11 }
  0xc9   :  { %58 = vadd.xlane.f32.xlu1 %v57_v13 }
  0xcd   :  { %61 = vadd.xlane.f32.xlu1 %v60_v14 }
 0x152   :  { %v47_v15 = vpop.xlane.xlu1 %46 }
 0x153   :  { %104 = vlog2.f32 %v47_v15 }
 0x156   :  { %v59_v16 = vpop.xlane.xlu1 %58 }
 0x157   :  { %v63_v20 = vmul.f32 0.9, %v59_v16 }
 0x15a   :  { %v62_v18 = vpop.xlane.xlu1 %61 }
 0x15b   :  { %v65_v22 = vmul.f32 0.003125, %v62_v18 }
 0x15d   :  { %v105_v17 = vpop.eup %104 }
 0x15e   :  { %v49_v19 = vmul.f32 0.6931472, %v105_v17 }
 0x160   :  { %v64_v21 = vsub.f32 %v49_v19, %v63_v20 }
 0x162   :  { %v66_v23 = vsub.f32 %v64_v21, %v65_v22 }
 0x164   :  { %v74_v24 = vrot.slane %v66_v23, 4 }
 0x166   :  { %v75_v25 = vadd.f32 %v74_v24, %v66_v23 }
 0x168   :  { %v76_v26 = vrot.slane %v75_v25, 2 }
 0x16a   :  { %v77_v27 = vadd.f32 %v76_v26, %v75_v25 }
 0x16c   :  { %v78_v28 = vrot.slane %v77_v27, 1 }
 0x16e   :  { %v79_v29 = vadd.f32 %v78_v28, %v77_v27 }
 0x170   :  { %80 = vst [vmem:[#allocation7] sm:$0xff] %v79_v29 }
 0x171   :  { %161 = shalt.err (!%p158_p6)
}
 0x172   :  { %s162_s8 = scalar_lea.hbm %s239_s2, 128 }
 0x173   :  { %p163_p7 = scmp.ne.s32.totalorder %s239_s2, %s162_s8  ;;  %p166_p8 = scmp.lt.u32.totalorder %s162_s8, %s239_s2 }
 0x175   :  { %p168_p9 = pnand %p166_p8, %p163_p7 }
 0x177   :  { %171 = shalt.err (!%p168_p9)
}
 0x178   :  { %90 = dma.vmem_to_hbm [thread:$0]  %s88_s4, 128, %s239_s2, [#allocation4]  }
 0x179   :  { %176 = dma.done.wait [#allocation4], 128  }
 0x17a   :  { %177 = vsyncadd [#allocation4], 4294967168 }
 0x17b   :  { %94 = vsyncpa [#allocation3], 1 }
 0x17c   :  { %95 = vsyncpa [#allocation6], 1 }
 0x17d   :  { %96 = vsyncpa [#allocation4], 1 }

</bundles_post_ra>
